<compile_context>
chip_gen: v6e
topology: v6e:2x2x1
jax: 0.10.0
libtpu: 0.0.40
codegen_flags: <defaults>
</compile_context>

<pallas_src>
import functools

import jax
import jax.numpy as jnp
from jax.experimental import pallas as pl
from jax.experimental.pallas import tpu as pltpu


def _cdiv(a, b):
    return -(-a // b)


def _round_up(a, b):
    return _cdiv(a, b) * b


def _num_tensorcores():
    # v7x exposes 2 TensorCores per chip; v5e / v6e have 1.  Default to 1 when
    # the device kind is unknown -- the 1-core path is always valid.
    try:
        kind = jax.devices()[0].device_kind.lower()
    except Exception:
        return 1
    return 2 if ("v7" in kind or "7x" in kind) else 1


def _joints2d_loss_kernel(slab_ref, out_ref, acc_ref, *, sigma):
    """slab_ref: (3, tile_rows, L) f32 block holding [dx, dy, conf].
       out_ref : (1, 8, L) per-core partial-sum block (written on last step).
       acc_ref : (8, L) f32 running accumulator (persists across grid steps)."""
    @pl.when(pl.program_id(1) == 0)
    def _():
        acc_ref[...] = jnp.zeros_like(acc_ref)

    dx = slab_ref[0]
    dy = slab_ref[1]
    c = slab_ref[2]

    s2 = jnp.float32(sigma) * jnp.float32(sigma)
    dx2 = dx * dx
    dy2 = dy * dy
    # Geman-McClure.  Exact division: the kernel is HBM-bound with ample
    # VALU/EUP slack, so exactness is free and matches PyTorch closely.
    g = s2 * dx2 / (s2 + dx2) + s2 * dy2 / (s2 + dy2)
    contrib = (c * c) * g                                    # (tile_rows, L)

    r, l = contrib.shape
    # Strip-reduce into the (8, L) accumulator: layout-preserving sublane-group
    # split (multiple of 8), pure VPU adds, no full-block acc load/store.
    acc_ref[...] += contrib.reshape(r // 8, 8, l).sum(axis=0)

    @pl.when(pl.program_id(1) == pl.num_programs(1) - 1)
    def _():
        out_ref[0] = acc_ref[...]                            # lane-dense (8, L)


def joints2d_loss(joints2d_obs, joints2d_pred, mask=None,
                  ignore_op_joints=None, joints2d_sigma=100,
                  block_rows=1024, block_lanes=512):
    """
    joints2d_obs : (B, T, J, 3) float  (x, y, conf)
    joints2d_pred: (B, T, J, 2) float  (x, y)
    mask         : optional (B, T) bool
    Returns scalar float32 loss.
    """
    B, T, J, _ = joints2d_obs.shape
    N = B * T

    obs = joints2d_obs.reshape(N, J, 3).astype(jnp.float32)
    pred = joints2d_pred.reshape(N, J, 2).astype(jnp.float32)

    # Confidence with ignore_op_joints and the frame mask folded in.  Masking
    # by multiplication is equivalent to PyTorch's boolean frame selection
    # because every summand is conf^2 * gmof >= 0.
    conf = obs[..., 2]                                        # (N, J)
    if ignore_op_joints is not None:
        keep = jnp.ones((J,), jnp.float32).at[
            jnp.asarray(ignore_op_joints)].set(0.0)
        conf = conf * keep[None, :]
    if mask is not None:
        m = mask.reshape(N).astype(jnp.float32)
        conf = conf * m[:, None]

    # Residual computed in the repack pass (it already touches every channel),
    # so the kernel only reads dx, dy, conf: 40% less HBM traffic.
    dx = (pred[..., 0] - obs[..., 0]).reshape(-1)             # (N*J,)
    dy = (pred[..., 1] - obs[..., 1]).reshape(-1)
    cf = conf.reshape(-1)

    # ---- lane-dense slab sizing (all Python ints / static shapes) ----------
    L = int(block_lanes)                      # lanes, multiple of 128
    total = N * J
    rows_needed = max(1, _cdiv(total, L))

    tile_rows = min(int(block_rows), _round_up(rows_needed, 8))
    n_blocks = _cdiv(rows_needed, tile_rows)
    n_cores = _num_tensorcores()
    if n_blocks < n_cores:
        n_cores = 1                            # never pad in a whole zero block
    n_blocks = _round_up(n_blocks, n_cores)
    # Shrink the block so the padded grid covers rows_needed with minimal waste.
    tile_rows = min(tile_rows, _round_up(_cdiv(rows_needed, n_blocks), 8))
    rows_padded = n_blocks * tile_rows
    inner = n_blocks // n_cores
    pad = rows_padded * L - total

    # One stacked slab -> one DMA per grid step; padded tail contributes exactly
    # 0 (conf = 0 and d = 0 there).
    # TODO(synk): optionally store dx/dy/conf as bf16 (upcast in-kernel, math
    # stays f32) to halve the remaining HBM traffic if ~1e-3 rel. error is OK.
    flat = jnp.stack([dx, dy, cf], axis=0)                    # (3, total)
    if pad:
        flat = jnp.pad(flat, ((0, 0), (0, pad)))
    slab = flat.reshape(3, rows_padded, L)

    kernel = functools.partial(_joints2d_loss_kernel,
                               sigma=float(joints2d_sigma))

    if n_cores == 1:
        semantics = ("arbitrary", "arbitrary")
    else:
        # v7x: actually shard the leading axis across the two TensorCores.
        semantics = (pltpu.CORE_PARALLEL, pltpu.ARBITRARY)

    out = pl.pallas_call(
        kernel,
        out_shape=jax.ShapeDtypeStruct((n_cores, 8, L), jnp.float32),
        grid_spec=pltpu.PrefetchScalarGridSpec(
            num_scalar_prefetch=0,
            grid=(n_cores, inner),
            in_specs=[pl.BlockSpec((3, tile_rows, L),
                                   lambda c, i: (0, c * inner + i, 0))],
            out_specs=pl.BlockSpec((1, 8, L), lambda c, i: (c, 0, 0)),
            scratch_shapes=[pltpu.VMEM((8, L), jnp.float32)],
        ),
        compiler_params=pltpu.CompilerParams(
            dimension_semantics=semantics,
            vmem_limit_bytes=32 * 1024 * 1024),
    )(slab)

    # Tiny final reduction over the (n_cores, 8, L) partial-sum slab.
    return jnp.sum(out)


def _reference(joints2d_obs, joints2d_pred, mask, sigma, ignore_op_joints=None):
    # Pure-JAX reference mirroring the PyTorch forward.
    conf = joints2d_obs[..., 2:3]
    if ignore_op_joints is not None:
        conf = conf.at[..., ignore_op_joints, :].set(0.0)
    d = joints2d_pred - joints2d_obs[..., :2]
    g = (sigma ** 2) * (d ** 2) / (sigma ** 2 + d ** 2)
    err = conf ** 2 * g
    if mask is not None:
        err = err * mask[..., None, None].astype(err.dtype)
    return jnp.sum(err)


if __name__ == "__main__":
    key = jax.random.PRNGKey(0)
    k1, k2, k3 = jax.random.split(key, 3)

    B, T, J = 2, 8, 22   # obs and pred share J so the residual is well-defined
    sigma = 100
    ignore_op_joints = [1, 9]

    obs_xy = jax.random.normal(k1, (B, T, J, 2), jnp.float32) * 50.0
    conf = jax.random.uniform(k2, (B, T, J, 1), jnp.float32)
    joints2d_obs = jnp.concatenate([obs_xy, conf], axis=-1)              # (B,T,J,3)
    joints2d_pred = obs_xy + jax.random.normal(k3, (B, T, J, 2), jnp.float32) * 5.0
    mask = (jnp.arange(T)[None, :] < jnp.array([[6], [8]])).astype(bool)  # (B,T)

    loss = joints2d_loss(joints2d_obs, joints2d_pred, mask,
                         ignore_op_joints=ignore_op_joints,
                         joints2d_sigma=sigma)
    loss = jax.block_until_ready(loss)

    ref = _reference(joints2d_obs, joints2d_pred, mask, sigma,
                     ignore_op_joints=ignore_op_joints)
    assert jnp.allclose(loss, ref, rtol=1e-3, atol=1e-2), (loss, ref)
    print("KERNEL_OK")
</pallas_src>

<mosaic_0001>
module attributes {stable_mosaic.version = 11 : i64} {
  func.func @_joints2d_loss_kernel(%arg0: i32, %arg1: i32, %arg2: memref<3x8x512xf32, #tpu.memory_space<vmem>>, %arg3: memref<1x8x512xf32, #tpu.memory_space<vmem>>, %arg4: memref<8x512xf32, #tpu.memory_space<vmem>>) attributes {dimension_semantics = [#tpu.dimension_semantics<arbitrary>, #tpu.dimension_semantics<arbitrary>], iteration_bounds = array<i64: 1, 1>, scalar_prefetch = 0 : i64, scratch_operands = 1 : i64, tpu.core_type = #tpu.core_type<tc>, window_params = [{transform_indices = @transform_0, window_bounds = array<i64: 3, 8, 512>}, {transform_indices = @transform_1, window_bounds = array<i64: 1, 8, 512>}]} {
    %c0_i32 = arith.constant 0 : i32
    %0 = arith.cmpi eq, %arg1, %c0_i32 : i32
    %1 = arith.extui %0 : i1 to i32
    %c0_i32_0 = arith.constant 0 : i32
    %2 = arith.cmpi ne, %1, %c0_i32_0 : i32
    scf.if %2 {
      %cst_15 = arith.constant 0.000000e+00 : f32
      %33 = vector.broadcast %cst_15 : f32 to vector<8x512xf32>
      %c0_16 = arith.constant 0 : index
      %c0_17 = arith.constant 0 : index
      %34 = vector.load %arg4[%c0_16, %c0_17] : memref<8x512xf32, #tpu.memory_space<vmem>>, vector<8x512xf32>
      tpu.vector_store %arg4[%c0_16, %c0_17], %33 {strides = array<i32>} : memref<8x512xf32, #tpu.memory_space<vmem>>, vector<8x512xf32>,
    } else {
    }
    %c0 = arith.constant 0 : index
    %c0_1 = arith.constant 0 : index
    %c0_2 = arith.constant 0 : index
    %3 = vector.load %arg2[%c0, %c0_1, %c0_2] : memref<3x8x512xf32, #tpu.memory_space<vmem>>, vector<1x8x512xf32>
    %4 = vector.shape_cast %3 : vector<1x8x512xf32> to vector<8x512xf32>
    %c1 = arith.constant 1 : index
    %c0_3 = arith.constant 0 : index
    %c0_4 = arith.constant 0 : index
    %5 = vector.load %arg2[%c1, %c0_3, %c0_4] : memref<3x8x512xf32, #tpu.memory_space<vmem>>, vector<1x8x512xf32>
    %6 = vector.shape_cast %5 : vector<1x8x512xf32> to vector<8x512xf32>
    %c2 = arith.constant 2 : index
    %c0_5 = arith.constant 0 : index
    %c0_6 = arith.constant 0 : index
    %7 = vector.load %arg2[%c2, %c0_5, %c0_6] : memref<3x8x512xf32, #tpu.memory_space<vmem>>, vector<1x8x512xf32>
    %8 = vector.shape_cast %7 : vector<1x8x512xf32> to vector<8x512xf32>
    %cst = arith.constant 1.000000e+02 : f32
    %cst_7 = arith.constant 1.000000e+02 : f32
    %9 = arith.mulf %cst, %cst_7 : f32
    %10 = arith.mulf %4, %4 : vector<8x512xf32>
    %11 = arith.mulf %6, %6 : vector<8x512xf32>
    %12 = vector.broadcast %9 : f32 to vector<8x512xf32>
    %13 = arith.mulf %12, %10 : vector<8x512xf32>
    %14 = vector.broadcast %9 : f32 to vector<8x512xf32>
    %15 = arith.addf %14, %10 : vector<8x512xf32>
    %16 = arith.divf %13, %15 : vector<8x512xf32>
    %17 = vector.broadcast %9 : f32 to vector<8x512xf32>
    %18 = arith.mulf %17, %11 : vector<8x512xf32>
    %19 = vector.broadcast %9 : f32 to vector<8x512xf32>
    %20 = arith.addf %19, %11 : vector<8x512xf32>
    %21 = arith.divf %18, %20 : vector<8x512xf32>
    %22 = arith.addf %16, %21 : vector<8x512xf32>
    %23 = arith.mulf %8, %8 : vector<8x512xf32>
    %24 = arith.mulf %23, %22 : vector<8x512xf32>
    %c0_8 = arith.constant 0 : index
    %c0_9 = arith.constant 0 : index
    %25 = vector.load %arg4[%c0_8, %c0_9] : memref<8x512xf32, #tpu.memory_space<vmem>>, vector<8x512xf32>
    %26 = vector.shape_cast %24 : vector<8x512xf32> to vector<1x8x512xf32>
    %cst_10 = arith.constant dense<0.000000e+00> : vector<8x512xf32>
    %27 = vector.multi_reduction <add>, %26, %cst_10 [0] : vector<1x8x512xf32> to vector<8x512xf32>
    %28 = arith.addf %25, %27 : vector<8x512xf32>
    %c0_11 = arith.constant 0 : index
    %c0_12 = arith.constant 0 : index
    %29 = vector.load %arg4[%c0_11, %c0_12] : memref<8x512xf32, #tpu.memory_space<vmem>>, vector<8x512xf32>
    tpu.vector_store %arg4[%c0_11, %c0_12], %28 {strides = array<i32>} : memref<8x512xf32, #tpu.memory_space<vmem>>, vector<8x512xf32>,
    %c0_i32_13 = arith.constant 0 : i32
    %30 = arith.cmpi eq, %arg1, %c0_i32_13 : i32
    %31 = arith.extui %30 : i1 to i32
    %c0_i32_14 = arith.constant 0 : i32
    %32 = arith.cmpi ne, %31, %c0_i32_14 : i32
    scf.if %32 {
      %c0_15 = arith.constant 0 : index
      %c0_16 = arith.constant 0 : index
      %33 = vector.load %arg4[%c0_15, %c0_16] : memref<8x512xf32, #tpu.memory_space<vmem>>, vector<8x512xf32>
      %c0_17 = arith.constant 0 : index
      %c0_18 = arith.constant 0 : index
      %c0_19 = arith.constant 0 : index
      %34 = vector.load %arg3[%c0_17, %c0_18, %c0_19] : memref<1x8x512xf32, #tpu.memory_space<vmem>>, vector<1x8x512xf32>
      %35 = vector.shape_cast %34 : vector<1x8x512xf32> to vector<8x512xf32>
      %36 = vector.shape_cast %33 : vector<8x512xf32> to vector<1x8x512xf32>
      tpu.vector_store %arg3[%c0_17, %c0_18, %c0_19], %36 {strides = array<i32>} : memref<1x8x512xf32, #tpu.memory_space<vmem>>, vector<1x8x512xf32>,
    } else {
    }
    return
  }
  func.func @transform_0(%arg0: i32, %arg1: i32) -> (i32, i32, i32) {
    %c1_i32 = arith.constant 1 : i32
    %0 = arith.muli %arg0, %c1_i32 : i32
    %1 = arith.addi %0, %arg1 : i32
    %c0_i32 = arith.constant 0 : i32
    %c0_i32_0 = arith.constant 0 : i32
    %c0_i32_1 = arith.constant 0 : i32
    return %c0_i32, %1, %c0_i32_0 : i32, i32, i32
  }
  func.func @transform_1(%arg0: i32, %arg1: i32) -> (i32, i32, i32) {
    %c0_i32 = arith.constant 0 : i32
    %c0_i32_0 = arith.constant 0 : i32
    %c0_i32_1 = arith.constant 0 : i32
    return %arg0, %c0_i32, %c0_i32_0 : i32, i32, i32
  }
}

</mosaic_0001>

<bundles_post_ra>
// kernel: tpu_custom_call.1
= control target key start
LH: loop header
LB: loop body
LE: loop exit
PB: predicated region body
PF: predicated region fallthrough
CT: control target
= control target key end

     0   :  { %6 = vsyncpa [#allocation4], 0  ;;  %s228_s0 = inlined_call_operand.hbm [shape: f32[3,8,512], index: 0, kind: input, shape index: {}]   ;;  %s229_s1 = inlined_call_operand.hbm [shape: f32[1,8,512], index: 1, kind: output, shape index: {}]  }
   0x1   :  { %7 = vsyncpa [#allocation5], 0  ;;  %s208_s6 = smov [#allocation3]  }
   0x2   :  { %s17_s7 = sshll.u32 %s208_s6, 4  ;;  %s18_s7 = int_to_ptr.vmem [resolvable:$true] %s17_s7 }
   0x3   :  { %s172_s8 = scalar_lea.vmem %s18_s7, 1536  ;;  %p177_p1 = scmp.lt.s32.totalorder %s18_s7, %s18_s7 }
   0x4   :  { %p173_p0 = scmp.ne.s32.totalorder %s18_s7, %s172_s8  ;;  %p178_p2 = scmp.lt.s32.totalorder %s172_s8, %s172_s8 }
   0x6   :  { %p179_p3 = por %p178_p2, %p177_p1 }
   0x8   :  { %p180_p4 = pnand %p179_p3, %p173_p0 }
   0xa   :  { %183 = shalt.err (!%p180_p4)
}
   0xb   :  { %s209_s9 = smov 512   ;;  %s210_s10 = smov 32  }
   0xc   :  { %23 = dma.hbm_to_vmem [thread:$0]  %s228_s0, 1536, %s18_s7, [#allocation4], %s209_s9, %s209_s9, %s210_s10  }
   0xd   :  { %204 = dma.done.wait [#allocation4], 1536  }
   0xe   :  { %205 = vsyncadd [#allocation4], 4294965760  ;;  %v36_v0 = vld [vmem:[#allocation3] sm:$0xff]  ;;  %v37_v4 = vld [vmem:[#allocation3 + $0x8] sm:$0xff]  ;;  %s211_s0 = smov [#allocation6]  }
   0xf   :  { %v41_v1 = vld [vmem:[#allocation3 + $0x20] sm:$0xff]  ;;  %v50_v2 = vmul.f32 %v36_v0, %v36_v0  ;;  %v42_v5 = vld [vmem:[#allocation3 + $0x28] sm:$0xff]  ;;  %v51_v6 = vmul.f32 %v37_v4, %v37_v4  ;;  %v38_v8 = vld [vmem:[#allocation3 + $0x10] sm:$0xff]  ;;  %s135_s13 = sshll.u32 %s211_s0, 4  ;;  %s136_s13 = int_to_ptr.vmem [resolvable:$true] %s135_s13 }
  0x10   :  { %v54_v3 = vmul.f32 %v41_v1, %v41_v1  ;;  %v55_v7 = vmul.f32 %v42_v5, %v42_v5  ;;  %v43_v9 = vld [vmem:[#allocation3 + $0x30] sm:$0xff]  ;;  %v39_v12 = vld [vmem:[#allocation3 + $0x18] sm:$0xff]  ;;  %v52_v16 = vmul.f32 %v38_v8, %v38_v8  ;;  %v46_v26 = vld [vmem:[#allocation3 + $0x40] sm:$0xff]  ;;  %s184_s14 = scalar_lea.vmem %s136_s13, 512  ;;  %p189_p6 = scmp.lt.s32.totalorder %s136_s13, %s136_s13 }
  0x11   :  { %v62_v10 = vadd.f32 10000.0, %v50_v2  ;;  %v44_v13 = vld [vmem:[#allocation3 + $0x38] sm:$0xff]  ;;  %v63_v14 = vadd.f32 10000.0, %v51_v6  ;;  %v56_v17 = vmul.f32 %v43_v9, %v43_v9  ;;  %v53_v18 = vmul.f32 %v39_v12, %v39_v12  ;;  %v47_v32 = vld [vmem:[#allocation3 + $0x48] sm:$0xff]  ;;  %v48_v40 = vld [vmem:[#allocation3 + $0x50] sm:$0xff]  ;;  %p185_p5 = scmp.ne.s32.totalorder %s136_s13, %s184_s14  ;;  %p190_p7 = scmp.lt.s32.totalorder %s184_s14, %s184_s14 }
  0x12   :  { %v78_v11 = vadd.f32 10000.0, %v54_v3  ;;  %v79_v15 = vadd.f32 10000.0, %v55_v7  ;;  %v57_v19 = vmul.f32 %v44_v13, %v44_v13  ;;  %v64_v20 = vadd.f32 10000.0, %v52_v16  ;;  %v49_v49 = vld [vmem:[#allocation3 + $0x58] sm:$0xff] }
  0x13   :  { %148 = vrcp.f32 %v62_v10  ;;  %v80_v21 = vadd.f32 10000.0, %v56_v17  ;;  %v65_v22 = vadd.f32 10000.0, %v53_v18  ;;  %v58_v24 = vmul.f32 10000.0, %v50_v2  ;;  %p191_p8 = por %p190_p7, %p189_p6 }
  0x14   :  { %150 = vrcp.f32 %v78_v11  ;;  %v81_v23 = vadd.f32 10000.0, %v57_v19  ;;  %v74_v25 = vmul.f32 10000.0, %v54_v3  ;;  %v59_v27 = vmul.f32 10000.0, %v51_v6 }
  0x15   :  { %152 = vrcp.f32 %v63_v14  ;;  %v75_v29 = vmul.f32 10000.0, %v55_v7  ;;  %v60_v33 = vmul.f32 10000.0, %v52_v16  ;;  %v94_v36 = vmul.f32 %v46_v26, %v46_v26  ;;  %p192_p9 = pnand %p191_p8, %p185_p5 }
  0x16   :  { %154 = vrcp.f32 %v79_v15  ;;  %v76_v37 = vmul.f32 10000.0, %v56_v17  ;;  %v61_v41 = vmul.f32 10000.0, %v53_v18  ;;  %v95_v45 = vmul.f32 %v47_v32, %v47_v32 }
  0x17   :  { %156 = vrcp.f32 %v64_v20  ;;  %v77_v46 = vmul.f32 10000.0, %v57_v19  ;;  %v96_v54 = vmul.f32 %v48_v40, %v48_v40  ;;  %v97_v60 = vmul.f32 %v49_v49, %v49_v49 }
  0x18   :  { %158 = vrcp.f32 %v80_v21 }
  0x19   :  { %160 = vrcp.f32 %v65_v22 }
  0x1a   :  { %162 = vrcp.f32 %v81_v23 }
  0x20   :  { %v149_v28 = vpop.eup %148 }
  0x21   :  { %v151_v30 = vpop.eup %150  ;;  %v67_v31 = vmul.f32 %v149_v28, %v58_v24 }
  0x22   :  { %v153_v34 = vpop.eup %152  ;;  %v83_v35 = vmul.f32 %v151_v30, %v74_v25 }
  0x23   :  { %v155_v38 = vpop.eup %154  ;;  %v69_v39 = vmul.f32 %v153_v34, %v59_v27 }
  0x24   :  { %v157_v42 = vpop.eup %156  ;;  %v90_v43 = vadd.f32 %v83_v35, %v67_v31  ;;  %v85_v44 = vmul.f32 %v155_v38, %v75_v29 }
  0x25   :  { %v159_v47 = vpop.eup %158  ;;  %v71_v48 = vmul.f32 %v157_v42, %v60_v33 }
  0x26   :  { %v161_v50 = vpop.eup %160  ;;  %v98_v51 = vmul.f32 %v94_v36, %v90_v43  ;;  %v91_v52 = vadd.f32 %v85_v44, %v69_v39  ;;  %v87_v53 = vmul.f32 %v159_v47, %v76_v37 }
  0x27   :  { %v163_v55 = vpop.eup %162  ;;  %v73_v56 = vmul.f32 %v161_v50, %v61_v41 }
  0x28   :  { %125 = vst [vmem:[#allocation6] sm:$0xff] %v98_v51  ;;  %v99_v57 = vmul.f32 %v95_v45, %v91_v52  ;;  %v92_v58 = vadd.f32 %v87_v53, %v71_v48  ;;  %v89_v59 = vmul.f32 %v163_v55, %v77_v46 }
  0x2a   :  { %126 = vst [vmem:[#allocation6 + $0x8] sm:$0xff] %v99_v57  ;;  %v100_v61 = vmul.f32 %v96_v54, %v92_v58  ;;  %v93_v62 = vadd.f32 %v89_v59, %v73_v56 }
  0x2c   :  { %127 = vst [vmem:[#allocation6 + $0x10] sm:$0xff] %v100_v61  ;;  %v101_v63 = vmul.f32 %v97_v60, %v93_v62 }
  0x2e   :  { %128 = vst [vmem:[#allocation6 + $0x18] sm:$0xff] %v101_v63 }
  0x2f   :  { %195 = shalt.err (!%p192_p9)
}
  0x30   :  { %138 = dma.vmem_to_hbm [thread:$0]  %s136_s13, 512, %s229_s1, [#allocation5]  }
  0x31   :  { %206 = dma.done.wait [#allocation5], 512  }
  0x32   :  { %207 = vsyncadd [#allocation5], 4294966784 }
  0x33   :  { %142 = vsyncpa [#allocation4], 1 }
  0x34   :  { %143 = vsyncpa [#allocation5], 1 }

</bundles_post_ra>
